<compile_context>
chip_gen: v5e
topology: v5e:2x2
jax: 0.10.0
libtpu: 0.0.40
codegen_flags: <defaults>
</compile_context>

<pallas_src>
import functools

import jax
import jax.numpy as jnp
from jax.experimental import pallas as pl
from jax.experimental.pallas import tpu as pltpu


def _round_up(x, m):
    return ((x + m - 1) // m) * m


def _fwd_kernel(state_ref, w1_ref, b1_ref, w2_ref, b2_ref, wh_ref, bh_ref,
                q_ref, advsum_ref, *, num_actions, valid_rows_last, tile_b):
    # Hidden stack: two Linear + Tanh layers (MXU matmul, EUP tanh).
    x = jnp.tanh(
        jnp.dot(state_ref[...], w1_ref[...], preferred_element_type=jnp.float32)
        + b1_ref[...])
    x = jnp.tanh(
        jnp.dot(x, w2_ref[...], preferred_element_type=jnp.float32)
        + b2_ref[...])

    # Fused, lane-dense head: cols [0, A) = advantage_j + value, col A = value,
    # cols > A are exact zeros (padding up to a multiple of 128).  Stored
    # straight from the MXU result (unmasked vst); pad lanes sliced off by the
    # wrapper; the global-mean subtraction happens in XLA afterwards.
    head = (jnp.dot(x, wh_ref[...], preferred_element_type=jnp.float32)
            + bh_ref[...])                                     # [TILE_B, HEAD_PAD]
    q_ref[...] = head

    # Per-row advantage sum via identity (pad lanes are exactly zero):
    #   rowsum(head) = sum_j(adv_j + value) + value = sum(adv) + (A+1)*value
    value = head[:, num_actions:num_actions + 1]               # [TILE_B, 1]
    row_adv = (jnp.sum(head, axis=1, keepdims=True)
               - jnp.float32(num_actions + 1) * value)         # [TILE_B, 1]

    if valid_rows_last == tile_b:
        # No batch padding anywhere: plain sublane reduce on every tile.
        advsum_ref[...] = jnp.sum(row_adv, axis=0, keepdims=True).reshape(1, 1, 1)
    else:
        i = pl.program_id(0)
        last = pl.num_programs(0) - 1

        @pl.when(i != last)
        def _():
            advsum_ref[...] = jnp.sum(
                row_adv, axis=0, keepdims=True).reshape(1, 1, 1)

        @pl.when(i == last)
        def _():
            # Padding rows only exist in the last tile; mask is [TILE_B, 1].
            rows = jax.lax.broadcasted_iota(jnp.int32, row_adv.shape, 0)
            masked = jnp.where(rows < valid_rows_last, row_adv, 0.0)
            advsum_ref[...] = jnp.sum(
                masked, axis=0, keepdims=True).reshape(1, 1, 1)


def pack_params(p):
    """One-time packing: fuse value+advantage heads into one lane-dense head.

    W_head[:, j<A] = Wa[:, j] + Wv[:, 0]   -> head col j = advantage_j + value
    W_head[:, A]   = Wv[:, 0]              -> kept so the kernel can recover the
                                              pure-advantage sum
    Columns > A are exact zeros (lane padding to a multiple of 128).
    """
    hidden = p["w1"].shape[1]
    num_actions = p["wa"].shape[1]
    head_pad = max(128, _round_up(num_actions + 1, 128))

    w_head = jnp.zeros((hidden, head_pad), jnp.float32)
    w_head = w_head.at[:, :num_actions].set(p["wa"] + p["wv"])
    w_head = w_head.at[:, num_actions:num_actions + 1].set(p["wv"])
    b_head = jnp.zeros((1, head_pad), jnp.float32)
    b_head = b_head.at[:, :num_actions].set(p["ba"] + p["bv"])
    b_head = b_head.at[:, num_actions:num_actions + 1].set(p["bv"])

    return {"w1": p["w1"], "b1": p["b1"], "w2": p["w2"], "b2": p["b2"],
            "w_head": w_head, "b_head": b_head}


def qnetwork_forward(state, packed, num_actions, *, max_tile_b=1024):
    """state: [B, num_inputs] f32; packed: output of pack_params()."""
    B, num_inputs = state.shape
    hidden = packed["w1"].shape[1]
    head_pad = packed["w_head"].shape[1]

    # Batch tiling: bounded padding (<8 extra rows per tile), large tiles to
    # amortize the ~0.35us per-grid-step overhead.
    n_tiles = pl.cdiv(B, max_tile_b)
    tile_b = _round_up(pl.cdiv(B, n_tiles), 8)
    b_pad = n_tiles * tile_b
    if b_pad != B:
        state = jnp.pad(state, ((0, b_pad - B), (0, 0)))
    valid_rows_last = B - (n_tiles - 1) * tile_b
    assert 0 < valid_rows_last <= tile_b

    flops = 2 * b_pad * (num_inputs * hidden + hidden * hidden
                         + hidden * head_pad)
    transcendentals = 2 * b_pad * hidden
    bytes_accessed = 4 * (b_pad * num_inputs + b_pad * head_pad
                          + num_inputs * hidden + hidden * hidden
                          + hidden * head_pad + 2 * hidden + head_pad + n_tiles)

    # NOTE(v7x): for hidden >= ~2048 the resident f32 weights approach the
    # 32 MiB scoped-VMEM default; cast weights to bf16 at pack time and/or set
    # vmem_limit_bytes / single-buffer the constant weight blocks there.
    q_pre, adv_part = pl.pallas_call(
        functools.partial(_fwd_kernel, num_actions=num_actions,
                          valid_rows_last=valid_rows_last, tile_b=tile_b),
        grid=(n_tiles,),
        in_specs=[
            pl.BlockSpec((tile_b, num_inputs), lambda i: (i, 0)),  # state
            pl.BlockSpec((num_inputs, hidden), lambda i: (0, 0)),  # w1 (resident)
            pl.BlockSpec((1, hidden), lambda i: (0, 0)),           # b1
            pl.BlockSpec((hidden, hidden), lambda i: (0, 0)),      # w2
            pl.BlockSpec((1, hidden), lambda i: (0, 0)),           # b2
            pl.BlockSpec((hidden, head_pad), lambda i: (0, 0)),    # w_head
            pl.BlockSpec((1, head_pad), lambda i: (0, 0)),         # b_head
        ],
        out_specs=[
            pl.BlockSpec((tile_b, head_pad), lambda i: (i, 0)),    # q (pre-mean)
            pl.BlockSpec((1, 1, 1), lambda i: (i, 0, 0)),          # per-tile adv sum
        ],
        out_shape=[
            jax.ShapeDtypeStruct((b_pad, head_pad), jnp.float32),
            jax.ShapeDtypeStruct((n_tiles, 1, 1), jnp.float32),
        ],
        compiler_params=pltpu.CompilerParams(
            dimension_semantics=("parallel",)),  # independent tiles -> megacore
        cost_estimate=pl.CostEstimate(
            flops=flops, transcendentals=transcendentals,
            bytes_accessed=bytes_accessed),
    )(state, packed["w1"], packed["b1"], packed["w2"], packed["b2"],
      packed["w_head"], packed["b_head"])

    # Exact global mean over the real [B, A] advantage entries, then one fused
    # XLA slice+subtract (this replaces the old second pallas_call pass).
    adv_mean = jnp.sum(adv_part) / jnp.float32(B * num_actions)
    return q_pre[:B, :num_actions] - adv_mean


def init_params(key, num_inputs, num_actions, hidden_dim):
    """Deterministic synthetic init (uniform, PyTorch-Linear-like scale)."""
    ks = jax.random.split(key, 8)

    def lin(kw, kb, fan_in, fan_out):
        bound = 1.0 / jnp.sqrt(fan_in)
        w = jax.random.uniform(kw, (fan_in, fan_out), jnp.float32, -bound, bound)
        b = jax.random.uniform(kb, (1, fan_out), jnp.float32, -bound, bound)
        return w, b

    w1, b1 = lin(ks[0], ks[1], num_inputs, hidden_dim)
    w2, b2 = lin(ks[2], ks[3], hidden_dim, hidden_dim)
    wv, bv = lin(ks[4], ks[5], hidden_dim, 1)
    wa, ba = lin(ks[6], ks[7], hidden_dim, num_actions)
    return {"w1": w1, "b1": b1, "w2": w2, "b2": b2,
            "wv": wv, "bv": bv, "wa": wa, "ba": ba}


def reference_forward(state, p):
    """Pure-JAX reference for correctness checking (matches PyTorch forward)."""
    x = jnp.tanh(state @ p["w1"] + p["b1"])
    x = jnp.tanh(x @ p["w2"] + p["b2"])
    values = x @ p["wv"] + p["bv"]
    advantages = x @ p["wa"] + p["ba"]
    return values + (advantages - jnp.mean(advantages))


if __name__ == "__main__":
    B, NUM_INPUTS, NUM_ACTIONS, HIDDEN = 8, 32, 8, 32

    key = jax.random.PRNGKey(0)
    k_state, k_params = jax.random.split(key)
    state = jax.random.normal(k_state, (B, NUM_INPUTS), dtype=jnp.float32)
    params = init_params(k_params, NUM_INPUTS, NUM_ACTIONS, HIDDEN)
    packed = pack_params(params)

    qvals = qnetwork_forward(state, packed, NUM_ACTIONS)
    qvals = jax.block_until_ready(qvals)

    ref = reference_forward(state, params)
    assert qvals.shape == (B, NUM_ACTIONS)
    assert jnp.allclose(qvals, ref, atol=2e-5, rtol=2e-5), "mismatch vs reference"

    print("KERNEL_OK")
</pallas_src>

<mosaic_0001>
module attributes {stable_mosaic.version = 11 : i64} {
  func.func @_fwd_kernel(%arg0: i32, %arg1: memref<8x32xf32, #tpu.memory_space<vmem>>, %arg2: memref<32x32xf32, #tpu.memory_space<vmem>>, %arg3: memref<1x32xf32, #tpu.memory_space<vmem>>, %arg4: memref<32x32xf32, #tpu.memory_space<vmem>>, %arg5: memref<1x32xf32, #tpu.memory_space<vmem>>, %arg6: memref<32x128xf32, #tpu.memory_space<vmem>>, %arg7: memref<1x128xf32, #tpu.memory_space<vmem>>, %arg8: memref<8x128xf32, #tpu.memory_space<vmem>>, %arg9: memref<1x1x1xf32, #tpu.memory_space<vmem>>) attributes {dimension_semantics = [#tpu.dimension_semantics<parallel>], iteration_bounds = array<i64: 1>, scalar_prefetch = 0 : i64, scratch_operands = 0 : i64, tpu.core_type = #tpu.core_type<tc>, window_params = [{transform_indices = @transform_0, window_bounds = array<i64: 8, 32>}, {pipeline_mode = #tpu.pipeline_mode<synchronous>, transform_indices = @transform_1, window_bounds = array<i64: 32, 32>}, {pipeline_mode = #tpu.pipeline_mode<synchronous>, transform_indices = @transform_2, window_bounds = array<i64: 1, 32>}, {pipeline_mode = #tpu.pipeline_mode<synchronous>, transform_indices = @transform_3, window_bounds = array<i64: 32, 32>}, {pipeline_mode = #tpu.pipeline_mode<synchronous>, transform_indices = @transform_4, window_bounds = array<i64: 1, 32>}, {pipeline_mode = #tpu.pipeline_mode<synchronous>, transform_indices = @transform_5, window_bounds = array<i64: 32, 128>}, {pipeline_mode = #tpu.pipeline_mode<synchronous>, transform_indices = @transform_6, window_bounds = array<i64: 1, 128>}, {transform_indices = @transform_7, window_bounds = array<i64: 8, 128>}, {transform_indices = @transform_8, window_bounds = array<i64: 1, 1, 1>}]} {
    %c0 = arith.constant 0 : index
    %c0_0 = arith.constant 0 : index
    %0 = vector.load %arg1[%c0, %c0_0] : memref<8x32xf32, #tpu.memory_space<vmem>>, vector<8x32xf32>
    %c0_1 = arith.constant 0 : index
    %c0_2 = arith.constant 0 : index
    %1 = vector.load %arg2[%c0_1, %c0_2] : memref<32x32xf32, #tpu.memory_space<vmem>>, vector<32x32xf32>
    %cst = arith.constant dense<0.000000e+00> : vector<8x32xf32>
    %2 = tpu.matmul %0, %1, %cst {dimension_numbers = #tpu.dot_dimension_numbers<[1], [0], [0], [1], [0, 0, 1, 1], [], []>} : vector<8x32xf32>, vector<32x32xf32>, vector<8x32xf32> -> vector<8x32xf32>
    %c0_3 = arith.constant 0 : index
    %c0_4 = arith.constant 0 : index
    %3 = vector.load %arg3[%c0_3, %c0_4] : memref<1x32xf32, #tpu.memory_space<vmem>>, vector<1x32xf32>
    %4 = vector.broadcast %3 : vector<1x32xf32> to vector<8x32xf32>
    %5 = arith.addf %2, %4 : vector<8x32xf32>
    %6 = math.tanh %5 : vector<8x32xf32>
    %c0_5 = arith.constant 0 : index
    %c0_6 = arith.constant 0 : index
    %7 = vector.load %arg4[%c0_5, %c0_6] : memref<32x32xf32, #tpu.memory_space<vmem>>, vector<32x32xf32>
    %cst_7 = arith.constant dense<0.000000e+00> : vector<8x32xf32>
    %8 = tpu.matmul %6, %7, %cst_7 {dimension_numbers = #tpu.dot_dimension_numbers<[1], [0], [0], [1], [0, 0, 1, 1], [], []>} : vector<8x32xf32>, vector<32x32xf32>, vector<8x32xf32> -> vector<8x32xf32>
    %c0_8 = arith.constant 0 : index
    %c0_9 = arith.constant 0 : index
    %9 = vector.load %arg5[%c0_8, %c0_9] : memref<1x32xf32, #tpu.memory_space<vmem>>, vector<1x32xf32>
    %10 = vector.broadcast %9 : vector<1x32xf32> to vector<8x32xf32>
    %11 = arith.addf %8, %10 : vector<8x32xf32>
    %12 = math.tanh %11 : vector<8x32xf32>
    %c0_10 = arith.constant 0 : index
    %c0_11 = arith.constant 0 : index
    %13 = vector.load %arg6[%c0_10, %c0_11] : memref<32x128xf32, #tpu.memory_space<vmem>>, vector<32x128xf32>
    %cst_12 = arith.constant dense<0.000000e+00> : vector<8x128xf32>
    %14 = tpu.matmul %12, %13, %cst_12 {dimension_numbers = #tpu.dot_dimension_numbers<[1], [0], [0], [1], [0, 0, 1, 1], [], []>} : vector<8x32xf32>, vector<32x128xf32>, vector<8x128xf32> -> vector<8x128xf32>
    %c0_13 = arith.constant 0 : index
    %c0_14 = arith.constant 0 : index
    %15 = vector.load %arg7[%c0_13, %c0_14] : memref<1x128xf32, #tpu.memory_space<vmem>>, vector<1x128xf32>
    %16 = vector.broadcast %15 : vector<1x128xf32> to vector<8x128xf32>
    %17 = arith.addf %14, %16 : vector<8x128xf32>
    %c0_15 = arith.constant 0 : index
    %c0_16 = arith.constant 0 : index
    %18 = vector.load %arg8[%c0_15, %c0_16] : memref<8x128xf32, #tpu.memory_space<vmem>>, vector<8x128xf32>
    tpu.vector_store %arg8[%c0_15, %c0_16], %17 {strides = array<i32>} : memref<8x128xf32, #tpu.memory_space<vmem>>, vector<8x128xf32>,
    %19 = vector.extract_strided_slice %17 {offsets = [0, 8], sizes = [8, 1], strides = [1, 1]} : vector<8x128xf32> to vector<8x1xf32>
    %cst_17 = arith.constant dense<0.000000e+00> : vector<8xf32>
    %20 = vector.multi_reduction <add>, %17, %cst_17 [1] : vector<8x128xf32> to vector<8xf32>
    %21 = vector.shape_cast %20 : vector<8xf32> to vector<8x1xf32>
    %cst_18 = arith.constant 9.000000e+00 : f32
    %22 = vector.broadcast %cst_18 : f32 to vector<8x1xf32>
    %23 = arith.mulf %22, %19 : vector<8x1xf32>
    %24 = arith.subf %21, %23 : vector<8x1xf32>
    %cst_19 = arith.constant dense<0.000000e+00> : vector<1xf32>
    %25 = vector.multi_reduction <add>, %24, %cst_19 [0] : vector<8x1xf32> to vector<1xf32>
    %26 = vector.shape_cast %25 : vector<1xf32> to vector<1x1xf32>
    %27 = vector.shape_cast %26 : vector<1x1xf32> to vector<1x1x1xf32>
    %c0_20 = arith.constant 0 : index
    %c0_21 = arith.constant 0 : index
    %c0_22 = arith.constant 0 : index
    %28 = vector.load %arg9[%c0_20, %c0_21, %c0_22] : memref<1x1x1xf32, #tpu.memory_space<vmem>>, vector<1x1x1xf32>
    tpu.vector_store %arg9[%c0_20, %c0_21, %c0_22], %27 {strides = array<i32>} : memref<1x1x1xf32, #tpu.memory_space<vmem>>, vector<1x1x1xf32>,
    return
  }
  func.func @transform_0(%arg0: i32) -> (i32, i32) {
    %c0_i32 = arith.constant 0 : i32
    %c0_i32_0 = arith.constant 0 : i32
    return %arg0, %c0_i32 : i32, i32
  }
  func.func @transform_1(%arg0: i32) -> (i32, i32) {
    %c0_i32 = arith.constant 0 : i32
    %c0_i32_0 = arith.constant 0 : i32
    %c0_i32_1 = arith.constant 0 : i32
    return %c0_i32, %c0_i32_0 : i32, i32
  }
  func.func @transform_2(%arg0: i32) -> (i32, i32) {
    %c0_i32 = arith.constant 0 : i32
    %c0_i32_0 = arith.constant 0 : i32
    %c0_i32_1 = arith.constant 0 : i32
    return %c0_i32, %c0_i32_0 : i32, i32
  }
  func.func @transform_3(%arg0: i32) -> (i32, i32) {
    %c0_i32 = arith.constant 0 : i32
    %c0_i32_0 = arith.constant 0 : i32
    %c0_i32_1 = arith.constant 0 : i32
    return %c0_i32, %c0_i32_0 : i32, i32
  }
  func.func @transform_4(%arg0: i32) -> (i32, i32) {
    %c0_i32 = arith.constant 0 : i32
    %c0_i32_0 = arith.constant 0 : i32
    %c0_i32_1 = arith.constant 0 : i32
    return %c0_i32, %c0_i32_0 : i32, i32
  }
  func.func @transform_5(%arg0: i32) -> (i32, i32) {
    %c0_i32 = arith.constant 0 : i32
    %c0_i32_0 = arith.constant 0 : i32
    %c0_i32_1 = arith.constant 0 : i32
    return %c0_i32, %c0_i32_0 : i32, i32
  }
  func.func @transform_6(%arg0: i32) -> (i32, i32) {
    %c0_i32 = arith.constant 0 : i32
    %c0_i32_0 = arith.constant 0 : i32
    %c0_i32_1 = arith.constant 0 : i32
    return %c0_i32, %c0_i32_0 : i32, i32
  }
  func.func @transform_7(%arg0: i32) -> (i32, i32) {
    %c0_i32 = arith.constant 0 : i32
    %c0_i32_0 = arith.constant 0 : i32
    return %arg0, %c0_i32 : i32, i32
  }
  func.func @transform_8(%arg0: i32) -> (i32, i32, i32) {
    %c0_i32 = arith.constant 0 : i32
    %c0_i32_0 = arith.constant 0 : i32
    %c0_i32_1 = arith.constant 0 : i32
    return %arg0, %c0_i32, %c0_i32_0 : i32, i32, i32
  }
}

</mosaic_0001>

<bundles_post_ra>
// kernel: tpu_custom_call.1
= control target key start
LH: loop header
LB: loop body
LE: loop exit
PB: predicated region body
PF: predicated region fallthrough
CT: control target
= control target key end

     0   :  { %14 = vsyncpa [#allocation3], 0  ;;  %s499_s0 = inlined_call_operand.hbm [shape: f32[8,32], index: 0, kind: input, shape index: {}]   ;;  %s500_s1 = inlined_call_operand.hbm [shape: f32[32,32], index: 1, kind: input, shape index: {}]   ;;  %s501_s2 = inlined_call_operand.vmem [shape: f32[1,32], index: 2, kind: input, shape index: {}]   ;;  %s502_s3 = inlined_call_operand.hbm [shape: f32[32,32], index: 3, kind: input, shape index: {}]   ;;  %s503_s4 = inlined_call_operand.vmem [shape: f32[1,32], index: 4, kind: input, shape index: {}]   ;;  %s504_s5 = inlined_call_operand.hbm [shape: f32[32,128], index: 5, kind: input, shape index: {}]   ;;  %s505_s6 = inlined_call_operand.vmem [shape: f32[1,128], index: 6, kind: input, shape index: {}]   ;;  %s506_s7 = inlined_call_operand.hbm [shape: f32[8,128], index: 7, kind: output, shape index: {0}]   ;;  %s507_s8 = inlined_call_operand.hbm [shape: f32[1,1,1], index: 8, kind: output, shape index: {1}]  }
   0x1   :  { %15 = vsyncpa [#allocation6], 0 }
   0x2   :  { %16 = vsyncpa [#allocation9], 0 }
   0x3   :  { %17 = vsyncpa [#allocation4], 0  ;;  %s34_s29 = sshll.u32 %s500_s1, 4  ;;  %s35_s29 = int_to_ptr.hbm [resolvable:$true] %s34_s29 }
   0x4   :  { %18 = vsyncpa [#allocation12], 0  ;;  %s415_s30 = smov [#allocation5]   ;;  %s24_s12 = sshll.u32 %s499_s0, 4  ;;  %s25_s12 = int_to_ptr.hbm [resolvable:$true] %s24_s12 }
   0x5   :  { %s36_s9 = sshll.u32 %s415_s30, 4  ;;  %s416_s13 = smov 128   ;;  %s37_s9 = int_to_ptr.vmem [resolvable:$true] %s36_s9 }
   0x6   :  { %s417_s14 = smov 8   ;;  %s418_s15 = smov [#allocation2]  }
   0x7   :  { %42 = dma.hbm_to_vmem [thread:$0]  %s35_s29, 512, %s37_s9, [#allocation6], %s416_s13, %s416_s13, %s417_s14  }
   0x8   :  { %s26_s16 = sshll.u32 %s418_s15, 4  ;;  %s49_s19 = sshll.u32 %s502_s3, 4  ;;  %s27_s16 = int_to_ptr.vmem [resolvable:$true] %s26_s16  ;;  %s50_s19 = int_to_ptr.hbm [resolvable:$true] %s49_s19 }
   0x9   :  { %29 = dma.hbm_to_vmem [thread:$0]  %s25_s12, 128, %s27_s16, [#allocation3]  }
   0xa   :  { %s64_s21 = sshll.u32 %s504_s5, 4  ;;  %s419_s22 = smov [#allocation7]   ;;  %s65_s21 = int_to_ptr.hbm [resolvable:$true] %s64_s21 }
   0xb   :  { %s51_s23 = sshll.u32 %s419_s22, 4  ;;  %s420_s0 = smov [#allocation8]   ;;  %s52_s23 = int_to_ptr.vmem [resolvable:$true] %s51_s23 }
   0xc   :  { %57 = dma.hbm_to_vmem [thread:$0]  %s50_s19, 512, %s52_s23, [#allocation6], %s416_s13, %s416_s13, %s417_s14  }
   0xd   :  { %s66_s24 = sshll.u32 %s420_s0, 4  ;;  %s67_s24 = int_to_ptr.vmem [resolvable:$true] %s66_s24 }
   0xe   :  { %72 = dma.hbm_to_vmem [thread:$0]  %s65_s21, 512, %s67_s24, [#allocation9], %s416_s13, %s416_s13, %s417_s14  }
   0xf   :  { %405 = dma.done.wait [#allocation3], 128  }
  0x10   :  { %406 = vsyncadd [#allocation3], 4294967168 }
  0x11   :  { %407 = dma.done.wait [#allocation6], 1024  }
  0x12   :  { %408 = vsyncadd [#allocation6], 4294966272 }
  0x13   :  { %409 = dma.done.wait [#allocation9], 512  }
  0x14   :  { %410 = vsyncadd [#allocation9], 4294966784  ;;  %v95_v0 = vld [vmem:[#allocation5 + $0x18] sm:$0xff]  ;;  %v94_v1 = vld [vmem:[#allocation5 + $0x10] sm:$0xff]  ;;  %vm100_vm0 = vcmask 261120   ;;  %vm193_vm1 = vcmask 72768  }
  0x15   :  { %116 = vmatpush.msra.mxu0 %v95_v0  ;;  %v93_v2 = vld [vmem:[#allocation5 + $0x8] sm:$0xff]  ;;  %v92_v3 = vld [vmem:[#allocation5] sm:$0xff]  ;;  %v91_v4 = vld [vmem:[#allocation2] sm:$0xff]  ;;  %s421_s28 = smov [#allocation10]   ;;  %s214_s9 = sshll.u32 %s506_s7, 4  ;;  %vm205_vm2 = vcmask 0   ;;  %s215_s9 = int_to_ptr.hbm [resolvable:$true] %s214_s9 }
  0x16   :  { %v128_v5 = vld [vmem:[#allocation7 + $0x18] sm:$0xff]  ;;  %v127_v6 = vld [vmem:[#allocation7 + $0x10] sm:$0xff]  ;;  %v126_v7 = vld [vmem:[#allocation7 + $0x8] sm:$0xff]  ;;  %s423_s10 = smov [#allocation11]   ;;  %s225_s14 = sshll.u32 %s507_s8, 4  ;;  %s226_s14 = int_to_ptr.hbm [resolvable:$true] %s225_s14 }
  0x17   :  { %117 = vmatpush.msra.mxu0 %v94_v1  ;;  %148 = vmatpush.msra.mxu1 %v128_v5  ;;  %v125_v8 = vld [vmem:[#allocation7] sm:$0xff]  ;;  %v254_v9 = vld [vmem:[%s501_s2] ss:$0 sm:$0xff]  ;;  %v159_v14 = vld [vmem:[#allocation8 + $0x10] sm:$0xff]  ;;  %s223_s11 = sshll.u32 %s423_s10, 4  ;;  %s224_s11 = int_to_ptr.vmem [resolvable:$true] %s223_s11 }
  0x18   :  { %v160_v13 = vld [vmem:[#allocation8 + $0x18] sm:$0xff]  ;;  %v158_v15 = vld [vmem:[#allocation8 + $0x8] sm:$0xff]  ;;  %v157_v16 = vld [vmem:[#allocation8] sm:$0xff] }
  0x19   :  { %118 = vmatpush.msra.mxu0 %v93_v2  ;;  %149 = vmatpush.msra.mxu1 %v127_v6  ;;  %v255_v17 = vld [vmem:[%s503_s4] ss:$0 sm:$0xff]  ;;  %s212_s4 = sshll.u32 %s421_s28, 4  ;;  %s213_s4 = int_to_ptr.vmem [resolvable:$true] %s212_s4 }
  0x1a   :  { %180 = vmatpush.msra.mxu2 %v160_v13  ;;  %v256_v21 = vld [vmem:[%s505_s6] ss:$0 sm:$0xff]  ;;  %s422_s6 = smov 120  }
  0x1b   :  { %119 = vmatpush.msra.mxu0 %v92_v3  ;;  %150 = vmatpush.msra.mxu1 %v126_v7 }
  0x1c   :  { %242 = vmatmul.msk.f32.vlgmr.msra.gmra.mxu0 %vm100_vm0, %v91_v4  ;;  %181 = vmatpush.msra.mxu2 %v159_v14 }
  0x1d   :  { %151 = vmatpush.msra.mxu1 %v125_v8 }
  0x1e   :  { %182 = vmatpush.msra.mxu2 %v158_v15 }
  0x20   :  { %183 = vmatpush.msra.mxu2 %v157_v16 }
  0x99   :  { %v121_v10 = vpop.f32.mrf.mxu0 }
  0x9a   :  { %v122_v11 = vadd.f32 %v254_v9, %v121_v10 }
  0x9c   :  { %257 = vtanh.f32 %v122_v11 }
  0xa2   :  { %v258_v12 = vpop.eup %257 }
  0xa3   :  { %243 = vmatmul.msk.f32.vlgmr.msra.gmra.mxu1 %vm100_vm0, %v258_v12 }
 0x120   :  { %v153_v18 = vpop.f32.mrf.mxu1 }
 0x121   :  { %v154_v19 = vadd.f32 %v255_v17, %v153_v18 }
 0x123   :  { %259 = vtanh.f32 %v154_v19 }
 0x129   :  { %v260_v20 = vpop.eup %259 }
 0x12a   :  { %244 = vmatmul.msk.f32.vlgmr.msra.gmra.mxu2 %vm100_vm0, %v260_v20 }
 0x1ad   :  { %v185_v22 = vpop.f32.mrf.mxu2 }
 0x1ae   :  { %v186_v23 = vadd.f32 %v256_v21, %v185_v22 }
 0x1b0   :  { %188 = vst [vmem:[#allocation10] sm:$0xff] %v186_v23  ;;  %189 = vadd.xlane.f32.xlu0 %v186_v23  ;;  %v191_v24 = vmul.f32 9.0, %v186_v23 }
 0x1b1   :  { %217 = dma.vmem_to_hbm [thread:$0]  %s213_s4, 128, %s215_s9, [#allocation4]  }
 0x223   :  { %v190_v25 = vpop.xlane.xlu0 %189 }
 0x224   :  { %v192_v26 = vsub.f32 %v190_v25, %v191_v24 }
 0x226   :  { %v194_v27 = vsel %vm193_vm1, %v192_v26, 0.0 }
 0x227   :  { %v195_v28 = vrot.slane %v194_v27, 4 }
 0x229   :  { %v196_v29 = vadd.f32 %v195_v28, %v194_v27 }
 0x22b   :  { %v197_v30 = vrot.slane %v196_v29, 2 }
 0x22d   :  { %v198_v31 = vadd.f32 %v197_v30, %v196_v29 }
 0x22f   :  { %v199_v32 = vrot.slane %v198_v31, 1 }
 0x231   :  { %v200_v33 = vadd.f32 %v199_v32, %v198_v31 }
 0x233   :  { %202 = vrot.lane.b32.xlu0 %v200_v33, %s422_s6 }
 0x2a5   :  { %v203_v34 = vpop.permute.xlu0 %202 }
 0x2a6   :  { %206 = vst.msk [vmem:[#allocation11] sm:$0x1] %vm205_vm2, %v203_v34 }
 0x2a7   :  { %228 = dma.vmem_to_hbm [thread:$0]  %s224_s11, 16, %s226_s14, [#allocation12]  }
 0x2a8   :  { %411 = dma.done.wait [#allocation4], 128  }
 0x2a9   :  { %412 = vsyncadd [#allocation4], 4294967168 }
 0x2aa   :  { %413 = dma.done.wait [#allocation12], 16  }
 0x2ab   :  { %414 = vsyncadd [#allocation12], 4294967280 }
 0x2ac   :  { %237 = vsyncpa [#allocation3], 1 }
 0x2ad   :  { %238 = vsyncpa [#allocation6], 1 }
 0x2ae   :  { %239 = vsyncpa [#allocation9], 1 }
 0x2af   :  { %240 = vsyncpa [#allocation4], 1 }
 0x2b0   :  { %241 = vsyncpa [#allocation12], 1 }

</bundles_post_ra>
